<compile_context>
chip_gen: v7x
topology: tpu7x:2x2x1
jax: 0.10.0
libtpu: 0.0.40
codegen_flags: <defaults>
</compile_context>

<pallas_src>
import functools

import jax
import jax.numpy as jnp
from jax.experimental import pallas as pl
from jax.experimental.pallas import tpu as pltpu


_MIB = 1024 * 1024


def _device_kind() -> str:
    try:
        return jax.devices()[0].device_kind.lower()
    except Exception:  # pragma: no cover - CPU fallback path
        return ""


def _default_block_bytes(kind: str) -> int:
    # HBM-bound elementwise kernel: pick blocks near each generation's knee.
    if "v5 lite" in kind or "v5e" in kind or "v5litepod" in kind:
        return 2 * _MIB          # 16 MiB scoped-VMEM default -> stay small
    if "7" in kind:              # v7x: 3.2 TB/s HBM, amortize per-step overhead
        return 8 * _MIB
    return 4 * _MIB              # v6e and friends


def _vmem_limit_bytes(kind: str, block_bytes: int):
    # Double-buffered in + out blocks (+ margin).  Only raise the limit when
    # the footprint would exceed the 32 MiB scoped default (v7x, 8 MiB blocks).
    need = 4 * block_bytes + 2 * _MIB
    if "7" in kind and need > 32 * _MIB:
        return min(need, 48 * _MIB)      # stays under 64 MiB physical per TC
    return None


def _num_tensorcores(kind: str) -> int:
    return 2 if "7" in kind else 1


# ----------------------------- kernels -------------------------------------


def _fused_kernel(params_ref, x_ref, o_ref):
    """Single pass: block = (tb, N) whole samples; per-row min/max + apply."""
    coef = params_ref[0]
    weight = params_ref[1]
    x = x_ref[...]
    # Min/max on the native dtype (exact), cast only the tiny per-row scalars.
    xmin = jnp.min(x, axis=-1, keepdims=True).astype(jnp.float32)
    xmax = jnp.max(x, axis=-1, keepdims=True).astype(jnp.float32)
    scale = coef / (xmax - xmin)          # per-sample divide only
    bias = weight - xmin * scale
    # Hot path: cast fused into 1 mul + 1 add per element.
    o_ref[...] = (x_ref[...].astype(jnp.float32) * scale + bias).astype(o_ref.dtype)


def _minmax_kernel(x_ref, min_ref, max_ref, *, n_total, tn):
    """Large-sample pass 1: running per-row min/max over the N grid."""
    j = pl.program_id(1)

    @pl.when(j == 0)
    def _():
        min_ref[...] = jnp.full(min_ref.shape, jnp.inf, dtype=min_ref.dtype)
        max_ref[...] = jnp.full(max_ref.shape, -jnp.inf, dtype=max_ref.dtype)

    x = x_ref[...].astype(jnp.float32)
    # Mask the trailing partial N block (its VMEM contents are undefined).
    lane = jax.lax.broadcasted_iota(jnp.int32, x.shape, 1) + j * tn
    valid = lane < n_total
    blk_min = jnp.min(jnp.where(valid, x, jnp.inf), axis=-1, keepdims=True)
    blk_max = jnp.max(jnp.where(valid, x, -jnp.inf), axis=-1, keepdims=True)
    min_ref[...] = jnp.minimum(min_ref[...], blk_min)
    max_ref[...] = jnp.maximum(max_ref[...], blk_max)


def _apply_kernel(params_ref, x_ref, min_ref, max_ref, o_ref):
    """Large-sample pass 2: out = x * scale + bias, streamed over (B, N)."""
    coef = params_ref[0]
    weight = params_ref[1]
    xmin = min_ref[...]
    xmax = max_ref[...]
    scale = coef / (xmax - xmin)
    bias = weight - xmin * scale
    o_ref[...] = (x_ref[...].astype(jnp.float32) * scale + bias).astype(o_ref.dtype)


# ----------------------------- wrapper --------------------------------------


@functools.partial(jax.jit, static_argnums=(2,))
def _p_ohem_impl(difference, params, block_bytes):
    orig_shape = difference.shape
    orig_dtype = difference.dtype
    b = orig_shape[0]
    x2 = difference.reshape(b, -1)        # bit-layout identity -> free under jit
    n = x2.shape[1]
    itemsize = x2.dtype.itemsize
    sample_bytes = n * itemsize

    kind = _device_kind()
    target = block_bytes if block_bytes is not None else _default_block_bytes(kind)
    vmem_limit = _vmem_limit_bytes(kind, target)
    cores = _num_tensorcores(kind)

    cp_extra = {}
    if vmem_limit is not None:
        cp_extra["vmem_limit_bytes"] = vmem_limit

    if sample_bytes <= target:
        # ---------------- fused single-pass path ----------------
        rows = max(1, target // max(sample_bytes, 1))
        if cores > 1 and b >= 2:
            # Keep >= 2 grid steps so both TensorCores get work (v7x).
            rows = min(rows, (b + cores - 1) // cores)
        if rows >= b:
            tb = b                        # block covers full batch dim
        elif rows >= 8:
            tb = (rows // 8) * 8          # sublane-friendly multiple of 8
        else:
            tb = 1                        # safe per-row blocks
        out2 = pl.pallas_call(
            _fused_kernel,
            out_shape=jax.ShapeDtypeStruct((b, n), orig_dtype),
            grid=(pl.cdiv(b, tb),),
            in_specs=[
                pl.BlockSpec(memory_space=pltpu.MemorySpace.SMEM),   # [coef, weight]
                pl.BlockSpec((tb, n), lambda i: (i, 0)),
            ],
            out_specs=pl.BlockSpec((tb, n), lambda i: (i, 0)),
            compiler_params=pltpu.CompilerParams(
                dimension_semantics=("parallel",), **cp_extra),
        )(params, x2)
        return out2.reshape(orig_shape)

    # ---------------- large-sample two-pass path ----------------
    tn = min(n, max(128, (target // itemsize) // 128 * 128))
    n_tiles = pl.cdiv(n, tn)
    tb = 1

    mn, mx = pl.pallas_call(
        functools.partial(_minmax_kernel, n_total=n, tn=tn),
        out_shape=(
            jax.ShapeDtypeStruct((b, 1), jnp.float32),
            jax.ShapeDtypeStruct((b, 1), jnp.float32),
        ),
        grid=(pl.cdiv(b, tb), n_tiles),
        in_specs=[pl.BlockSpec((tb, tn), lambda i, j: (i, j))],
        out_specs=(
            pl.BlockSpec((tb, 1), lambda i, j: (i, 0)),
            pl.BlockSpec((tb, 1), lambda i, j: (i, 0)),
        ),
        compiler_params=pltpu.CompilerParams(
            dimension_semantics=("parallel", "arbitrary"), **cp_extra),
    )(x2)

    out2 = pl.pallas_call(
        _apply_kernel,
        out_shape=jax.ShapeDtypeStruct((b, n), orig_dtype),
        grid=(pl.cdiv(b, tb), n_tiles),
        in_specs=[
            pl.BlockSpec(memory_space=pltpu.MemorySpace.SMEM),       # [coef, weight]
            pl.BlockSpec((tb, tn), lambda i, j: (i, j)),
            pl.BlockSpec((tb, 1), lambda i, j: (i, 0)),
            pl.BlockSpec((tb, 1), lambda i, j: (i, 0)),
        ],
        out_specs=pl.BlockSpec((tb, tn), lambda i, j: (i, j)),
        compiler_params=pltpu.CompilerParams(
            dimension_semantics=("parallel", "parallel"), **cp_extra),
    )(params, x2, mn, mx)
    return out2.reshape(orig_shape)


def p_ohem(difference, weight=1.0, coef=10.0, *, block_bytes=None):
    """Pallas implementation of P_OHEM.forward (scalar weight/coef)."""
    # TODO(synk): tensor-valued (per-element) `weight` maps are not supported
    # here; only scalar weight, which matches the module's default usage.
    params = jnp.stack([
        jnp.asarray(coef, dtype=jnp.float32).reshape(()),
        jnp.asarray(weight, dtype=jnp.float32).reshape(()),
    ])
    return _p_ohem_impl(difference, params, block_bytes)


def _p_ohem_ref(difference, weight=1.0, coef=10.0):
    b = difference.shape[0]
    flat = difference.reshape(b, -1)
    bshape = (b,) + (1,) * (difference.ndim - 1)
    mn = jnp.min(flat, axis=1).reshape(bshape)
    mx = jnp.max(flat, axis=1).reshape(bshape)
    return coef * (difference - mn) / (mx - mn) + weight


if __name__ == "__main__":
    key = jax.random.PRNGKey(0)
    k1, k2 = jax.random.split(key)
    weight, coef = 1.0, 10.0

    # 4-D (NCHW) input: exercises the fused single-pass path.
    x4 = jax.random.normal(k1, (2, 4, 16, 16), dtype=jnp.float32)
    out4 = jax.block_until_ready(p_ohem(x4, weight=weight, coef=coef))
    ref4 = _p_ohem_ref(x4, weight=weight, coef=coef)
    assert out4.shape == x4.shape and out4.dtype == x4.dtype
    assert jnp.allclose(out4, ref4, atol=1e-5, rtol=1e-5), "fused path mismatch"

    # 3-D input with a tiny block budget: exercises the two-pass N-grid path
    # (including the masked trailing partial N block, 2880 % 1024 != 0).
    x3 = jax.random.normal(k2, (2, 5, 576), dtype=jnp.float32)
    out3 = jax.block_until_ready(
        p_ohem(x3, weight=weight, coef=coef, block_bytes=4096))
    ref3 = _p_ohem_ref(x3, weight=weight, coef=coef)
    assert out3.shape == x3.shape and out3.dtype == x3.dtype
    assert jnp.allclose(out3, ref3, atol=1e-5, rtol=1e-5), "two-pass path mismatch"

    print("KERNEL_OK")
</pallas_src>

<mosaic_0001>
module attributes {stable_mosaic.version = 11 : i64} {
  func.func @_fused_kernel(%arg0: i32, %arg1: memref<2xf32, #tpu.memory_space<smem>>, %arg2: memref<2x1024xf32, #tpu.memory_space<vmem>>, %arg3: memref<2x1024xf32, #tpu.memory_space<vmem>>) attributes {dimension_semantics = [#tpu.dimension_semantics<parallel>], iteration_bounds = array<i64: 1>, scalar_prefetch = 0 : i64, scratch_operands = 0 : i64, tpu.core_type = #tpu.core_type<tc>, window_params = [{transform_indices = @transform_0, window_bounds = array<i64: 2>}, {transform_indices = @transform_1, window_bounds = array<i64: 2, 1024>}, {transform_indices = @transform_2, window_bounds = array<i64: 2, 1024>}]} {
    %c0 = arith.constant 0 : index
    %0 = memref.load %arg1[%c0] : memref<2xf32, #tpu.memory_space<smem>>
    %c1 = arith.constant 1 : index
    %1 = memref.load %arg1[%c1] : memref<2xf32, #tpu.memory_space<smem>>
    %c0_0 = arith.constant 0 : index
    %c0_1 = arith.constant 0 : index
    %2 = vector.load %arg2[%c0_0, %c0_1] : memref<2x1024xf32, #tpu.memory_space<vmem>>, vector<2x1024xf32>
    %cst = arith.constant dense<0x7F800000> : vector<2xf32>
    %3 = vector.multi_reduction <minimumf>, %2, %cst [1] : vector<2x1024xf32> to vector<2xf32>
    %4 = vector.shape_cast %3 : vector<2xf32> to vector<2x1xf32>
    %cst_2 = arith.constant dense<0xFF800000> : vector<2xf32>
    %5 = vector.multi_reduction <maximumf>, %2, %cst_2 [1] : vector<2x1024xf32> to vector<2xf32>
    %6 = vector.shape_cast %5 : vector<2xf32> to vector<2x1xf32>
    %7 = arith.subf %6, %4 : vector<2x1xf32>
    %8 = vector.broadcast %0 : f32 to vector<2x1xf32>
    %9 = arith.divf %8, %7 : vector<2x1xf32>
    %10 = arith.mulf %4, %9 : vector<2x1xf32>
    %11 = vector.broadcast %1 : f32 to vector<2x1xf32>
    %12 = arith.subf %11, %10 : vector<2x1xf32>
    %c0_3 = arith.constant 0 : index
    %c0_4 = arith.constant 0 : index
    %13 = vector.load %arg2[%c0_3, %c0_4] : memref<2x1024xf32, #tpu.memory_space<vmem>>, vector<2x1024xf32>
    %14 = vector.broadcast %9 : vector<2x1xf32> to vector<2x1024xf32>
    %15 = arith.mulf %13, %14 : vector<2x1024xf32>
    %16 = vector.broadcast %12 : vector<2x1xf32> to vector<2x1024xf32>
    %17 = arith.addf %15, %16 : vector<2x1024xf32>
    %c0_5 = arith.constant 0 : index
    %c0_6 = arith.constant 0 : index
    %18 = vector.load %arg3[%c0_5, %c0_6] : memref<2x1024xf32, #tpu.memory_space<vmem>>, vector<2x1024xf32>
    tpu.vector_store %arg3[%c0_5, %c0_6], %17 {strides = array<i32>} : memref<2x1024xf32, #tpu.memory_space<vmem>>, vector<2x1024xf32>,
    return
  }
  func.func @transform_0(%arg0: i32) -> i32 {
    %c0_i32 = arith.constant 0 : i32
    %c0_i32_0 = arith.constant 0 : i32
    return %c0_i32 : i32
  }
  func.func @transform_1(%arg0: i32) -> (i32, i32) {
    %c0_i32 = arith.constant 0 : i32
    %c0_i32_0 = arith.constant 0 : i32
    return %arg0, %c0_i32 : i32, i32
  }
  func.func @transform_2(%arg0: i32) -> (i32, i32) {
    %c0_i32 = arith.constant 0 : i32
    %c0_i32_0 = arith.constant 0 : i32
    return %arg0, %c0_i32 : i32, i32
  }
}

</mosaic_0001>

<bundles_post_ra>
// kernel: _p_ohem_impl.1
= control target key start
LH: loop header
LB: loop body
LE: loop exit
PB: predicated region body
PF: predicated region fallthrough
CT: control target
= control target key end

     0   :  { %7 = vsyncpa [#allocation3], 0  ;;  %s226_s0 = inlined_call_operand.vmem [shape: f32[2], index: 0, kind: input, shape index: {}]   ;;  %s227_s1 = inlined_call_operand.vmem [shape: f32[2,1024], index: 1, kind: input, shape index: {}]   ;;  %s228_s2 = inlined_call_operand.vmem [shape: f32[2,1024], index: 2, kind: output, shape index: {}]  }
   0x1   :  { %s14_s11 = sshll.u32 %s226_s0, 4  ;;  %s15_s11 = int_to_ptr.vmem [resolvable:$true] %s14_s11 }
   0x2   :  { %s151_s12 = scalar_lea.vmem %s15_s11, 16  ;;  %p156_p1 = scmp.lt.s32.totalorder %s15_s11, %s15_s11 }
   0x3   :  { %p152_p0 = scmp.ne.s32.totalorder %s15_s11, %s151_s12  ;;  %p157_p2 = scmp.lt.s32.totalorder %s151_s12, %s151_s12 }
   0x5   :  { %p158_p3 = por %p157_p2, %p156_p1 }
   0x7   :  { %p159_p4 = pnand %p158_p3, %p152_p0 }
   0x9   :  { %162 = shalt.err (!%p159_p4)
}
   0xa   :  { %s165_s13 = smov [#allocation2]  }
   0xb   :  { %17 = dma.vmem_to_smem %s15_s11, 16, %s165_s13, [#allocation3]  }
   0xc   :  { %163 = dma.done.wait [#allocation3], 16  }
   0xd   :  { %164 = vsyncadd [#allocation3], 4294967280 }
   0xe   :  { %23 = sfence }
   0xf   :  { %v189_v0 = vld [vmem:[%s227_s1] sm:$0xff]  ;;  %v194_v1 = vld [vmem:[%s227_s1 + $0x8] sm:$0xff]  ;;  %v34_v2 = vlaneseq  ;;  %v166_v3 = vmov 1983009808   ;;  %vm72_vm0 = vcmask 1041408   ;;  %s24_s1 = sld [smem:[#allocation2]] }
  0x10   :  { %v32_v4 = vunpack.c.l.s4 %v166_v3  ;;  %v30_v6 = vcombine.high %v189_v0, %v189_v0  ;;  %v47_v8 = vcombine.high %v194_v1, %v194_v1  ;;  %v167_v51 = vmov 269488144   ;;  %s143_s17 = sld [smem:[#allocation2 + $0x1]] }
  0x11   :  { %v35_v5 = vshrl.u32 %v34_v2, 7  ;;  %v116_v52 = vunpack.c.l.s4 %v167_v51 }
  0x12   :  { %v33_v7 = vunpack.c.0.s8 %v32_v4 }
  0x13   :  { %v117_v53 = vunpack.c.0.s8 %v116_v52 }
  0x14   :  { %v36_v9 = vsub.s32 %v33_v7, %v35_v5 }
  0x15   :  { %v108_v54 = vstv %s24_s1  ;;  %v120_v55 = vsub.s32 %v117_v53, %v35_v5 }
  0x16   :  { %v37_v10 = vrot.slane %v189_v0, %v36_v9  ;;  %v44_v11 = vrot.slane %v30_v6, %v36_v9  ;;  %v54_v12 = vrot.slane %v194_v1, %v36_v9  ;;  %v61_v13 = vrot.slane %v47_v8, %v36_v9 }
  0x17   :  { %v112_v58 = vstv %s143_s17 }
  0x18   :  { %v45_v14 = vcombine.high %v37_v10, %v37_v10  ;;  %v46_v15 = vcombine.high %v44_v11, %v44_v11  ;;  %v62_v16 = vcombine.high %v54_v12, %v54_v12  ;;  %v63_v17 = vcombine.high %v61_v13, %v61_v13 }
  0x19   :  { %v73_v18 = vsel %vm72_vm0, %v37_v10, inf  ;;  %v75_v19 = vsel %vm72_vm0, %v44_v11, inf  ;;  %v77_v20 = vsel %vm72_vm0, %v54_v12, inf  ;;  %v81_v21 = vsel %vm72_vm0, %v61_v13, inf }
  0x1a   :  { %v74_v22 = vsel %vm72_vm0, %v45_v14, inf  ;;  %v76_v23 = vsel %vm72_vm0, %v46_v15, inf  ;;  %v78_v24 = vmin.f32 %v73_v18, %v77_v20  ;;  %v79_v25 = vsel %vm72_vm0, %v62_v16, inf }
  0x1b   :  { %v80_v26 = vmin.f32 %v74_v22, %v79_v25  ;;  %v82_v27 = vmin.f32 %v75_v19, %v81_v21  ;;  %v83_v28 = vsel %vm72_vm0, %v63_v17, inf  ;;  %v90_v29 = vsel %vm72_vm0, %v37_v10, -inf }
  0x1c   :  { %v84_v30 = vmin.f32 %v76_v23, %v83_v28  ;;  %v91_v31 = vsel %vm72_vm0, %v45_v14, -inf  ;;  %v92_v32 = vsel %vm72_vm0, %v44_v11, -inf  ;;  %v93_v33 = vsel %vm72_vm0, %v46_v15, -inf }
  0x1d   :  { %v85_v34 = vmin.f32 %v78_v24, %v80_v26  ;;  %v94_v35 = vsel %vm72_vm0, %v54_v12, -inf  ;;  %v96_v36 = vsel %vm72_vm0, %v62_v16, -inf  ;;  %v98_v37 = vsel %vm72_vm0, %v61_v13, -inf }
  0x1e   :  { %v86_v38 = vmin.f32 %v82_v27, %v84_v30  ;;  %v95_v39 = vmax.f32 %v90_v29, %v94_v35  ;;  %v97_v40 = vmax.f32 %v91_v31, %v96_v36  ;;  %v99_v41 = vmax.f32 %v92_v32, %v98_v37 }
  0x1f   :  { %v100_v42 = vsel %vm72_vm0, %v63_v17, -inf }
  0x20   :  { %v87_v43 = vmin.f32 %v85_v34, %v86_v38  ;;  %v101_v44 = vmax.f32 %v93_v33, %v100_v42  ;;  %v102_v45 = vmax.f32 %v95_v39, %v97_v40 }
  0x22   :  { %88 = vmin.xlane.f32.xlu0 %v87_v43  ;;  %v103_v46 = vmax.f32 %v99_v41, %v101_v44 }
  0x24   :  { %v104_v47 = vmax.f32 %v102_v45, %v103_v46 }
  0x26   :  { %105 = vmax.xlane.f32.xlu0 %v104_v47 }
  0xaf   :  { %v89_v48 = vpop.xlane.xlu0 %88 }
  0xb3   :  { %v106_v49 = vpop.xlane.xlu0 %105 }
  0xb4   :  { %v107_v50 = vsub.f32 %v106_v49, %v89_v48 }
  0xb6   :  { %149 = vrcp.f32 %v107_v50 }
  0xc0   :  { %v150_v56 = vpop.eup %149 }
  0xc1   :  { %v110_v57 = vmul.f32 %v150_v56, %v108_v54 }
  0xc3   :  { %v111_v59 = vmul.f32 %v110_v57, %v89_v48  ;;  %v121_v60 = vrot.slane %v110_v57, %v120_v55 }
  0xc5   :  { %v113_v61 = vsub.f32 %v112_v58, %v111_v59  ;;  %v123_v62 = vmul.f32 %v121_v60, %v189_v0  ;;  %v124_v63 = vmul.f32 %v121_v60, %v194_v1 }
  0xc7   :  { %v132_v2 = vrot.slane %v113_v61, %v120_v55 }
  0xc9   :  { %v134_v3 = vadd.f32 %v132_v2, %v123_v62  ;;  %v135_v4 = vadd.f32 %v132_v2, %v124_v63 }
  0xcb   :  { %136 = vst [vmem:[%s228_s2] sm:$0xff] %v134_v3  ;;  %137 = vst [vmem:[%s228_s2 + $0x8] sm:$0xff] %v135_v4 }
  0xcc   :  { %142 = vsyncpa [#allocation3], 1 }

</bundles_post_ra>
